<compile_context>
chip_gen: v7x
topology: tpu7x:2x2x1
jax: 0.10.0
libtpu: 0.0.40
codegen_flags: <defaults>
</compile_context>

<pallas_src>
import functools

import jax
import jax.numpy as jnp
from jax.experimental import pallas as pl
from jax.experimental.pallas import tpu as pltpu

LANE = 128


def _round_up(x, m):
    return ((x + m - 1) // m) * m


def _mlp_kernel(x_ref, w1_ref, b1_ref, w2_ref, b2_ref, o_ref, *, matmul_dtype):
    # x_ref: (tm, E) f32, w1_ref: (E, E) matmul_dtype, b1_ref: (1, E) f32,
    # w2_ref: (E, 128) matmul_dtype, b2_ref: (1, 128) f32, o_ref: (tm, 128)
    x = x_ref[...].astype(matmul_dtype)
    h = jnp.dot(x, w1_ref[...], preferred_element_type=jnp.float32)
    h = jnp.maximum(h + b1_ref[...], 0.0)                 # bias + ReLU in f32 (VPU)
    y = jnp.dot(h.astype(matmul_dtype), w2_ref[...],
                preferred_element_type=jnp.float32)
    o_ref[...] = (y + b2_ref[...]).astype(o_ref.dtype)


def output_projection(point_embeddings, w1, b1, w2, b2, *, tm=512,
                      matmul_dtype=jnp.bfloat16):
    """point_embeddings: (B, N, E) f32 -> (B, N, 3) f32."""
    B, N, E = point_embeddings.shape
    out_dim = w2.shape[1]                                  # 3
    M = B * N

    # Row tile: big (amortizes grid-step overhead), multiple of 8 (sublane),
    # but keep >=2 grid steps when M is large enough (v7x 2-TC sharding).
    m8 = _round_up(M, 8)
    tm_eff = tm if m8 >= 2 * tm else m8
    M_pad = _round_up(M, tm_eff)
    grid_m = M_pad // tm_eff

    # Flatten rows; zero-pad ragged last tile (no divisibility constraint).
    x2d = point_embeddings.reshape(M, E)
    if M_pad != M:
        x2d = jnp.pad(x2d, ((0, M_pad - M), (0, 0)))

    # Lane-dense output: pad the 3-wide projection to 128 lanes.
    n_pad = _round_up(out_dim, LANE)
    w1c = w1.astype(matmul_dtype)
    w2p = jnp.pad(w2, ((0, 0), (0, n_pad - out_dim))).astype(matmul_dtype)
    b1_2d = b1.reshape(1, E).astype(jnp.float32)
    b2p = jnp.pad(b2.reshape(1, out_dim), ((0, 0), (0, n_pad - out_dim))).astype(jnp.float32)

    itemsize_w = jnp.dtype(matmul_dtype).itemsize
    cost = pl.CostEstimate(
        flops=2 * M_pad * E * (E + n_pad),
        transcendentals=0,
        bytes_accessed=4 * (M_pad * E + M_pad * n_pad + E + n_pad)
        + itemsize_w * (E * E + E * n_pad),
    )

    out2d = pl.pallas_call(
        functools.partial(_mlp_kernel, matmul_dtype=matmul_dtype),
        out_shape=jax.ShapeDtypeStruct((M_pad, n_pad), point_embeddings.dtype),
        grid_spec=pltpu.PrefetchScalarGridSpec(
            num_scalar_prefetch=0,
            grid=(grid_m,),
            in_specs=[
                pl.BlockSpec((tm_eff, E), lambda i: (i, 0)),   # x rows
                pl.BlockSpec((E, E), lambda i: (0, 0)),        # W1 (resident)
                pl.BlockSpec((1, E), lambda i: (0, 0)),        # b1
                pl.BlockSpec((E, n_pad), lambda i: (0, 0)),    # W2 (lane-padded)
                pl.BlockSpec((1, n_pad), lambda i: (0, 0)),    # b2 (lane-padded)
            ],
            out_specs=pl.BlockSpec((tm_eff, n_pad), lambda i: (i, 0)),
        ),
        compiler_params=pltpu.CompilerParams(
            dimension_semantics=("parallel",),
            vmem_limit_bytes=32 * 1024 * 1024,
        ),
        cost_estimate=cost,
    )(x2d, w1c, b1_2d, w2p, b2p)

    # Slice padded lanes/rows BEFORE reshaping back to (B, N, 3).
    return out2d[:M, :out_dim].reshape(B, N, out_dim)


def _ref_forward(point_embeddings, w1, b1, w2, b2):
    h = jnp.maximum(point_embeddings @ w1 + b1, 0.0)
    return h @ w2 + b2


if __name__ == "__main__":
    # Small shapes consistent with the module: batch=2, num_points=16, embedding_dim=32
    B, N, E = 2, 16, 32
    key = jax.random.PRNGKey(0)
    kx, kw1, kb1, kw2, kb2 = jax.random.split(key, 5)

    x = jax.random.normal(kx, (B, N, E), dtype=jnp.float32)

    # PyTorch-style uniform +-1/sqrt(fan_in), stored as (in, out) so kernel uses x @ W.
    lim1 = 1.0 / jnp.sqrt(jnp.float32(E))
    w1 = jax.random.uniform(kw1, (E, E), jnp.float32, -lim1, lim1)
    b1 = jax.random.uniform(kb1, (E,), jnp.float32, -lim1, lim1)
    lim2 = 1.0 / jnp.sqrt(jnp.float32(E))
    w2 = jax.random.uniform(kw2, (E, 3), jnp.float32, -lim2, lim2)
    b2 = jax.random.uniform(kb2, (3,), jnp.float32, -lim2, lim2)

    ref = _ref_forward(x, w1, b1, w2, b2)

    # 1) Exact-path check (f32 matmuls) — tight tolerance.
    out_f32 = output_projection(x, w1, b1, w2, b2, matmul_dtype=jnp.float32)
    out_f32 = jax.block_until_ready(out_f32)
    assert out_f32.shape == (B, N, 3), out_f32.shape
    assert jnp.allclose(out_f32, ref, atol=1e-5, rtol=1e-5), "f32 path mismatch vs reference"

    # 2) Default fast path (bf16 matmul inputs, f32 accumulation) — loosened tolerance.
    out_bf16 = output_projection(x, w1, b1, w2, b2)
    out_bf16 = jax.block_until_ready(out_bf16)
    assert out_bf16.shape == (B, N, 3), out_bf16.shape
    assert jnp.allclose(out_bf16, ref, atol=2e-2, rtol=2e-2), "bf16 path mismatch vs reference"

    # 3) Larger / ragged row count exercises padding + multi-step parallel grid.
    B2, N2 = 4, 300                                  # M = 1200 -> tm=512, grid=3 (padded)
    x2 = jax.random.normal(kx, (B2, N2, E), dtype=jnp.float32)
    out2 = jax.block_until_ready(output_projection(x2, w1, b1, w2, b2))
    ref2 = _ref_forward(x2, w1, b1, w2, b2)
    assert out2.shape == (B2, N2, 3), out2.shape
    assert jnp.allclose(out2, ref2, atol=2e-2, rtol=2e-2), "ragged-tile path mismatch"

    print("KERNEL_OK")
</pallas_src>

<mosaic_0001>
module attributes {stable_mosaic.version = 11 : i64} {
  func.func @_mlp_kernel(%arg0: i32, %arg1: memref<32x32xf32, #tpu.memory_space<vmem>>, %arg2: memref<32x32xf32, #tpu.memory_space<vmem>>, %arg3: memref<1x32xf32, #tpu.memory_space<vmem>>, %arg4: memref<32x128xf32, #tpu.memory_space<vmem>>, %arg5: memref<1x128xf32, #tpu.memory_space<vmem>>, %arg6: memref<32x128xf32, #tpu.memory_space<vmem>>) attributes {dimension_semantics = [#tpu.dimension_semantics<parallel>], iteration_bounds = array<i64: 1>, scalar_prefetch = 0 : i64, scratch_operands = 0 : i64, tpu.core_type = #tpu.core_type<tc>, window_params = [{transform_indices = @transform_0, window_bounds = array<i64: 32, 32>}, {pipeline_mode = #tpu.pipeline_mode<synchronous>, transform_indices = @transform_1, window_bounds = array<i64: 32, 32>}, {pipeline_mode = #tpu.pipeline_mode<synchronous>, transform_indices = @transform_2, window_bounds = array<i64: 1, 32>}, {pipeline_mode = #tpu.pipeline_mode<synchronous>, transform_indices = @transform_3, window_bounds = array<i64: 32, 128>}, {pipeline_mode = #tpu.pipeline_mode<synchronous>, transform_indices = @transform_4, window_bounds = array<i64: 1, 128>}, {transform_indices = @transform_5, window_bounds = array<i64: 32, 128>}]} {
    %c0 = arith.constant 0 : index
    %c0_0 = arith.constant 0 : index
    %0 = vector.load %arg1[%c0, %c0_0] : memref<32x32xf32, #tpu.memory_space<vmem>>, vector<32x32xf32>
    %c0_1 = arith.constant 0 : index
    %c0_2 = arith.constant 0 : index
    %1 = vector.load %arg2[%c0_1, %c0_2] : memref<32x32xf32, #tpu.memory_space<vmem>>, vector<32x32xf32>
    %cst = arith.constant dense<0.000000e+00> : vector<32x32xf32>
    %2 = tpu.matmul %0, %1, %cst {dimension_numbers = #tpu.dot_dimension_numbers<[1], [0], [0], [1], [0, 0, 1, 1], [], []>} : vector<32x32xf32>, vector<32x32xf32>, vector<32x32xf32> -> vector<32x32xf32>
    %c0_3 = arith.constant 0 : index
    %c0_4 = arith.constant 0 : index
    %3 = vector.load %arg3[%c0_3, %c0_4] : memref<1x32xf32, #tpu.memory_space<vmem>>, vector<1x32xf32>
    %4 = vector.broadcast %3 : vector<1x32xf32> to vector<32x32xf32>
    %5 = arith.addf %2, %4 : vector<32x32xf32>
    %cst_5 = arith.constant 0.000000e+00 : f32
    %6 = vector.broadcast %cst_5 : f32 to vector<32x32xf32>
    %7 = arith.maximumf %5, %6 : vector<32x32xf32>
    %c0_6 = arith.constant 0 : index
    %c0_7 = arith.constant 0 : index
    %8 = vector.load %arg4[%c0_6, %c0_7] : memref<32x128xf32, #tpu.memory_space<vmem>>, vector<32x128xf32>
    %cst_8 = arith.constant dense<0.000000e+00> : vector<32x128xf32>
    %9 = tpu.matmul %7, %8, %cst_8 {dimension_numbers = #tpu.dot_dimension_numbers<[1], [0], [0], [1], [0, 0, 1, 1], [], []>} : vector<32x32xf32>, vector<32x128xf32>, vector<32x128xf32> -> vector<32x128xf32>
    %c0_9 = arith.constant 0 : index
    %c0_10 = arith.constant 0 : index
    %10 = vector.load %arg5[%c0_9, %c0_10] : memref<1x128xf32, #tpu.memory_space<vmem>>, vector<1x128xf32>
    %11 = vector.broadcast %10 : vector<1x128xf32> to vector<32x128xf32>
    %12 = arith.addf %9, %11 : vector<32x128xf32>
    %c0_11 = arith.constant 0 : index
    %c0_12 = arith.constant 0 : index
    %13 = vector.load %arg6[%c0_11, %c0_12] : memref<32x128xf32, #tpu.memory_space<vmem>>, vector<32x128xf32>
    tpu.vector_store %arg6[%c0_11, %c0_12], %12 {strides = array<i32>} : memref<32x128xf32, #tpu.memory_space<vmem>>, vector<32x128xf32>,
    return
  }
  func.func @transform_0(%arg0: i32) -> (i32, i32) {
    %c0_i32 = arith.constant 0 : i32
    %c0_i32_0 = arith.constant 0 : i32
    return %arg0, %c0_i32 : i32, i32
  }
  func.func @transform_1(%arg0: i32) -> (i32, i32) {
    %c0_i32 = arith.constant 0 : i32
    %c0_i32_0 = arith.constant 0 : i32
    %c0_i32_1 = arith.constant 0 : i32
    return %c0_i32, %c0_i32_0 : i32, i32
  }
  func.func @transform_2(%arg0: i32) -> (i32, i32) {
    %c0_i32 = arith.constant 0 : i32
    %c0_i32_0 = arith.constant 0 : i32
    %c0_i32_1 = arith.constant 0 : i32
    return %c0_i32, %c0_i32_0 : i32, i32
  }
  func.func @transform_3(%arg0: i32) -> (i32, i32) {
    %c0_i32 = arith.constant 0 : i32
    %c0_i32_0 = arith.constant 0 : i32
    %c0_i32_1 = arith.constant 0 : i32
    return %c0_i32, %c0_i32_0 : i32, i32
  }
  func.func @transform_4(%arg0: i32) -> (i32, i32) {
    %c0_i32 = arith.constant 0 : i32
    %c0_i32_0 = arith.constant 0 : i32
    %c0_i32_1 = arith.constant 0 : i32
    return %c0_i32, %c0_i32_0 : i32, i32
  }
  func.func @transform_5(%arg0: i32) -> (i32, i32) {
    %c0_i32 = arith.constant 0 : i32
    %c0_i32_0 = arith.constant 0 : i32
    return %arg0, %c0_i32 : i32, i32
  }
}

</mosaic_0001>

<bundles_post_ra>
// kernel: tpu_custom_call.1
= control target key start
LH: loop header
LB: loop body
LE: loop exit
PB: predicated region body
PF: predicated region fallthrough
CT: control target
= control target key end

     0   :  { %10 = vsyncpa [#allocation3], 0  ;;  %s596_s0 = inlined_call_operand.hbm [shape: f32[32,32], index: 0, kind: input, shape index: {}]   ;;  %s597_s1 = inlined_call_operand.hbm [shape: f32[32,32], index: 1, kind: input, shape index: {}]   ;;  %s598_s2 = inlined_call_operand.vmem [shape: f32[1,32], index: 2, kind: input, shape index: {}]   ;;  %s599_s3 = inlined_call_operand.hbm [shape: f32[32,128], index: 3, kind: input, shape index: {}]   ;;  %s600_s4 = inlined_call_operand.vmem [shape: f32[1,128], index: 4, kind: input, shape index: {}]   ;;  %s601_s5 = inlined_call_operand.hbm [shape: f32[32,128], index: 5, kind: output, shape index: {}]  }
   0x1   :  { %11 = vsyncpa [#allocation6], 0 }
   0x2   :  { %12 = vsyncpa [#allocation4], 0  ;;  %s479_s18 = smov [#allocation5]   ;;  %s480_s20 = smov [#allocation2]  }
   0x3   :  { %s30_s19 = sshll.u32 %s479_s18, 4  ;;  %s18_s21 = sshll.u32 %s480_s20, 4  ;;  %s31_s19 = int_to_ptr.vmem [resolvable:$true] %s30_s19  ;;  %s515_s21 = int_to_ptr.vmem [resolvable:$true] %s18_s21 }
   0x4   :  { %s385_s24 = scalar_lea.hbm %s597_s1, 512 }
   0x5   :  { %p386_p0 = scmp.ne.s32.totalorder %s597_s1, %s385_s24  ;;  %p389_p1 = scmp.lt.u32.totalorder %s385_s24, %s597_s1 }
   0x7   :  { %p391_p2 = pnand %p389_p1, %p386_p0 }
   0x9   :  { %394 = shalt.err (!%p391_p2)
}
   0xa   :  { %s395_s29 = scalar_lea.vmem %s31_s19, 512  ;;  %p400_p4 = scmp.lt.s32.totalorder %s31_s19, %s31_s19 }
   0xb   :  { %p396_p3 = scmp.ne.s32.totalorder %s31_s19, %s395_s29  ;;  %p401_p5 = scmp.lt.s32.totalorder %s395_s29, %s395_s29 }
   0xd   :  { %p402_p6 = por %p401_p5, %p400_p4 }
   0xf   :  { %p403_p7 = pnand %p402_p6, %p396_p3 }
  0x11   :  { %406 = shalt.err (!%p403_p7)
}
  0x12   :  { %s481_s30 = smov 128   ;;  %s482_s6 = smov 8  }
  0x13   :  { %36 = dma.hbm_to_vmem [thread:$0]  %s597_s1, 512, %s31_s19, [#allocation6], %s481_s30, %s481_s30, %s482_s6  }
  0x14   :  { %s407_s11 = scalar_lea.hbm %s596_s0, 512 }
  0x15   :  { %p408_p8 = scmp.ne.s32.totalorder %s596_s0, %s407_s11  ;;  %p411_p9 = scmp.lt.u32.totalorder %s407_s11, %s596_s0 }
  0x17   :  { %p413_p10 = pnand %p411_p9, %p408_p8 }
  0x19   :  { %416 = shalt.err (!%p413_p10)
}
  0x1a   :  { %s417_s16 = scalar_lea.vmem %s515_s21, 512  ;;  %p422_p12 = scmp.lt.s32.totalorder %s515_s21, %s515_s21 }
  0x1b   :  { %p418_p11 = scmp.ne.s32.totalorder %s515_s21, %s417_s16  ;;  %p423_p13 = scmp.lt.s32.totalorder %s417_s16, %s417_s16 }
  0x1d   :  { %p424_p0 = por %p423_p13, %p422_p12 }
  0x1f   :  { %p425_p1 = pnand %p424_p0, %p418_p11 }
  0x21   :  { %428 = shalt.err (!%p425_p1)
}
  0x22   :  { %24 = dma.hbm_to_vmem [thread:$0]  %s596_s0, 512, %s515_s21, [#allocation3], %s481_s30, %s481_s30, %s482_s6  }
  0x23   :  { %s483_s18 = smov [#allocation7]   ;;  %s429_s23 = scalar_lea.hbm %s599_s3, 512 }
  0x24   :  { %s44_s19 = sshll.u32 %s483_s18, 4  ;;  %p430_p2 = scmp.ne.s32.totalorder %s599_s3, %s429_s23  ;;  %s45_s19 = int_to_ptr.vmem [resolvable:$true] %s44_s19 }
  0x25   :  { %p433_p3 = scmp.lt.u32.totalorder %s429_s23, %s599_s3 }
  0x27   :  { %p435_p4 = pnand %p433_p3, %p430_p2 }
  0x29   :  { %438 = shalt.err (!%p435_p4)
}
  0x2a   :  { %s439_s28 = scalar_lea.vmem %s45_s19, 512  ;;  %p444_p6 = scmp.lt.s32.totalorder %s45_s19, %s45_s19 }
  0x2b   :  { %p440_p5 = scmp.ne.s32.totalorder %s45_s19, %s439_s28  ;;  %p445_p7 = scmp.lt.s32.totalorder %s439_s28, %s439_s28 }
  0x2d   :  { %p446_p8 = por %p445_p7, %p444_p6 }
  0x2f   :  { %p447_p9 = pnand %p446_p8, %p440_p5 }
  0x31   :  { %450 = shalt.err (!%p447_p9)
}
  0x32   :  { %50 = dma.hbm_to_vmem [thread:$0]  %s599_s3, 512, %s45_s19, [#allocation6], %s481_s30, %s481_s30, %s482_s6  }
  0x33   :  { %473 = dma.done.wait [#allocation3], 512  }
  0x34   :  { %474 = vsyncadd [#allocation3], 4294966784 }
  0x35   :  { %475 = dma.done.wait [#allocation6], 1024  }
  0x36   :  { %476 = vsyncadd [#allocation6], 4294966272  ;;  %vm77_vm0 = vcmask 261120   ;;  %v66_v0 = vld [vmem:[#allocation5] sm:$0xff]  ;;  %v67_v1 = vld [vmem:[#allocation5 + $0x8] sm:$0xff]  ;;  %s484_s8 = smov [#allocation8]  }
  0x37   :  { %v68_v2 = vld [vmem:[#allocation5 + $0x10] sm:$0xff]  ;;  %v363_v3 = vpack.c.bf16 %v67_v1, %v66_v0  ;;  %v69_v4 = vld [vmem:[#allocation5 + $0x18] sm:$0xff]  ;;  %v62_v5 = vld [vmem:[#allocation2] sm:$0xff]  ;;  %s296_s9 = sshll.u32 %s484_s8, 4  ;;  %s297_s9 = int_to_ptr.vmem [resolvable:$true] %s296_s9 }
  0x38   :  { %v367_v6 = vpack.c.bf16 %v69_v4, %v68_v2  ;;  %343 = vmatprep.mubr.msk.f32.mxu0 %vm77_vm0, %v62_v5  ;;  %v179_v7 = vld [vmem:[#allocation7] sm:$0xff]  ;;  %v180_v8 = vld [vmem:[#allocation7 + $0x8] sm:$0xff]  ;;  %v64_v11 = vld [vmem:[#allocation2 + $0x10] sm:$0xff]  ;;  %s451_s10 = scalar_lea.vmem %s297_s9, 512  ;;  %p456_p11 = scmp.lt.s32.totalorder %s297_s9, %s297_s9 }
  0x39   :  { %364 = vmatprep.subr.bf16.mxu0 %v363_v3  ;;  %v371_v9 = vpack.c.bf16 %v180_v8, %v179_v7  ;;  %v63_v10 = vld [vmem:[#allocation2 + $0x8] sm:$0xff]  ;;  %v65_v12 = vld [vmem:[#allocation2 + $0x18] sm:$0xff]  ;;  %v181_v13 = vld [vmem:[#allocation7 + $0x10] sm:$0xff]  ;;  %p452_p10 = scmp.ne.s32.totalorder %s297_s9, %s451_s10  ;;  %p457_p12 = scmp.lt.s32.totalorder %s451_s10, %s451_s10 }
  0x3a   :  { %366 = vmatpush3.bf16.msra.mxu0 %v363_v3  ;;  %v182_v14 = vld [vmem:[#allocation7 + $0x18] sm:$0xff]  ;;  %v309_v16 = vld [vmem:[%s598_s2] ss:$0 sm:$0xff] }
  0x3b   :  { %368 = vmatprep.subr.bf16.mxu0 %v367_v6  ;;  %372 = vmatprep.subr.bf16.mxu1 %v371_v9  ;;  %v375_v15 = vpack.c.bf16 %v182_v14, %v181_v13  ;;  %v314_v29 = vld [vmem:[%s600_s4] ss:$0 sm:$0xff]  ;;  %p458_p13 = por %p457_p12, %p456_p11 }
  0x3c   :  { %374 = vmatpush3.bf16.msra.mxu1 %v371_v9 }
  0x3d   :  { %376 = vmatprep.subr.bf16.mxu1 %v375_v15  ;;  %p459_p0 = pnand %p458_p13, %p452_p10 }
  0x3e   :  { %370 = vmatpush3.bf16.msra.mxu0 %v367_v6 }
  0x40   :  { %378 = vmatpush3.bf16.msra.mxu1 %v375_v15 }
  0x41   :  { %344 = vmatmul.mubr.msk.f32.vlgmr.msra.gmra.mrb[0].mxu0 %vm77_vm0, %v63_v10 }
  0x42   :  { %346 = vmatprep.mubr.msk.f32.mxu0 %vm77_vm0, %v64_v11 }
  0x45   :  { %347 = vmatmul.mubr.msk.f32.gmra.mrb[2].mxu0 %vm77_vm0, %v65_v12 }
 0x114   :  { %v345_v17 = vpop.f32.mrb[0].mxu0 }
 0x115   :  { %v162_v18 = vadd.f32 %v345_v17, %v309_v16  ;;  %v156_v19 = vpop.f32.mrb[1].mxu0 }
 0x116   :  { %v157_v20 = vadd.f32 %v309_v16, %v156_v19 }
 0x117   :  { %v176_v23 = vmax.f32 %v162_v18, 0.0 }
 0x118   :  { %v175_v21 = vmax.f32 %v157_v20, 0.0  ;;  %v348_v22 = vpop.f32.mrb[2].mxu0 }
 0x119   :  { %v172_v24 = vadd.f32 %v348_v22, %v309_v16  ;;  %v166_v25 = vpop.f32.mrb[3].mxu0 }
 0x11a   :  { %v167_v26 = vadd.f32 %v309_v16, %v166_v25  ;;  %357 = vmatprep.mubr.msk.f32.mxu1 %vm77_vm0, %v175_v21 }
 0x11b   :  { %358 = vmatmul.mubr.msk.f32.vlgmr.msra.gmra.mrb[0].mxu1 %vm77_vm0, %v176_v23  ;;  %v178_v28 = vmax.f32 %v172_v24, 0.0 }
 0x11c   :  { %v177_v27 = vmax.f32 %v167_v26, 0.0 }
 0x11e   :  { %360 = vmatprep.mubr.msk.f32.mxu1 %vm77_vm0, %v177_v27 }
 0x11f   :  { %361 = vmatmul.mubr.msk.f32.gmra.mrb[2].mxu1 %vm77_vm0, %v178_v28 }
 0x1ee   :  { %v359_v30 = vpop.f32.mrb[0].mxu1 }
 0x1ef   :  { %v274_v31 = vadd.f32 %v359_v30, %v314_v29  ;;  %v268_v32 = vpop.f32.mrb[1].mxu1 }
 0x1f0   :  { %v269_v33 = vadd.f32 %v314_v29, %v268_v32 }
 0x1f1   :  { %288 = vst [vmem:[#allocation8 + $0x8] sm:$0xff] %v274_v31 }
 0x1f2   :  { %287 = vst [vmem:[#allocation8] sm:$0xff] %v269_v33  ;;  %v362_v34 = vpop.f32.mrb[2].mxu1 }
 0x1f3   :  { %v284_v35 = vadd.f32 %v362_v34, %v314_v29  ;;  %v278_v36 = vpop.f32.mrb[3].mxu1 }
 0x1f4   :  { %v279_v37 = vadd.f32 %v314_v29, %v278_v36 }
 0x1f5   :  { %290 = vst [vmem:[#allocation8 + $0x18] sm:$0xff] %v284_v35 }
 0x1f6   :  { %289 = vst [vmem:[#allocation8 + $0x10] sm:$0xff] %v279_v37 }
 0x1f7   :  { %462 = shalt.err (!%p459_p0)
}
 0x1f8   :  { %s463_s12 = scalar_lea.hbm %s601_s5, 512 }
 0x1f9   :  { %p464_p1 = scmp.ne.s32.totalorder %s601_s5, %s463_s12  ;;  %p467_p2 = scmp.lt.u32.totalorder %s463_s12, %s601_s5 }
 0x1fb   :  { %p469_p3 = pnand %p467_p2, %p464_p1 }
 0x1fd   :  { %472 = shalt.err (!%p469_p3)
}
 0x1fe   :  { %302 = dma.vmem_to_hbm [thread:$0]  %s297_s9, 512, %s601_s5, [#allocation4], %s481_s30, %s481_s30, %s482_s6  }
 0x1ff   :  { %477 = dma.done.wait [#allocation4], 512  }
 0x200   :  { %478 = vsyncadd [#allocation4], 4294966784 }
 0x201   :  { %306 = vsyncpa [#allocation3], 1 }
 0x202   :  { %307 = vsyncpa [#allocation6], 1 }
 0x203   :  { %308 = vsyncpa [#allocation4], 1 }

</bundles_post_ra>
